<compile_context>
chip_gen: v6e
topology: v6e:2x2x1
jax: 0.10.0
libtpu: 0.0.40
codegen_flags: <defaults>
</compile_context>

<pallas_src>
import functools

import jax
import jax.numpy as jnp
from jax import lax
from jax.experimental import pallas as pl
from jax.experimental.pallas import tpu as pltpu


# ----------------------------------------------------------------------------
# Pallas kernels
# ----------------------------------------------------------------------------
def _dot_kernel(enc_ref, dec_ref, out_ref):
    # enc: (blk, H), dec: (1, H)  ->  scores: (1, blk)
    # Contract both operands on their LAST dim (no .T / XLU transpose).
    out_ref[...] = lax.dot_general(
        dec_ref[...], enc_ref[...],
        dimension_numbers=(((1,), (1,)), ((), ())),
        preferred_element_type=jnp.float32)


def _concat_kernel(enc_ref, dec_ref, wt_ref, v_ref, out_ref):
    # h = dec + enc  (broadcast (1,H) + (blk,H) -> (blk,H))
    h = dec_ref[...] + enc_ref[...]
    # t = tanh(h @ W^T); W is pre-transposed to (in,out) -> plain dot.
    # tanh runs on the EUP at the true H width (no padded lanes).
    t = jnp.tanh(jnp.dot(h, wt_ref[...], preferred_element_type=jnp.float32))
    # scores[s] = sum_h v[h] * t[s, h]  (last-dim contraction, no transpose of t)
    out_ref[...] = lax.dot_general(
        v_ref[...], t,
        dimension_numbers=(((1,), (1,)), ((), ())),
        preferred_element_type=jnp.float32)


# ----------------------------------------------------------------------------
# Driver: pick S tile, build specs, call pallas_call.  No HBM padding anywhere.
# ----------------------------------------------------------------------------
def _round_up(x, m):
    return ((x + m - 1) // m) * m


def _pick_block(S, s_blk):
    """Pick the S tile size.

    * Whole sequence fits in one requested tile -> single exact (S, H) block:
      zero padding / masking anywhere.
    * Otherwise: tiles are a multiple of 128 rows (lane-dense, unmasked output
      stores), at least 512 rows (>=85% of HBM roofline vs ~30% at 128), and
      sized so the grid has >= 4 steps (>= 2 per TensorCore on v7x megacore).
    """
    s_blk = max(128, _round_up(s_blk, 128))
    if S <= s_blk:
        return S
    return min(s_blk, max(512, _round_up(pl.cdiv(S, 4), 128)))


def _run(kernel, enc, extras, S, H, s_blk, cost):
    blk = _pick_block(S, s_blk)
    grid = (pl.cdiv(S, blk),)
    in_specs = [pl.BlockSpec((blk, H), lambda i: (i, 0))]
    for arr in extras:
        # Constant whole-array blocks (dec / wt / v).  Bind ndim eagerly so the
        # index_map does not late-bind a loop variable.
        in_specs.append(pl.BlockSpec(arr.shape, lambda i, nd=arr.ndim: (0,) * nd))
    return pl.pallas_call(
        kernel,
        out_shape=jax.ShapeDtypeStruct((1, S), jnp.float32),
        grid=grid,
        in_specs=in_specs,
        out_specs=pl.BlockSpec((1, blk), lambda i: (0, i)),
        compiler_params=pltpu.CompilerParams(
            dimension_semantics=("parallel",)),
        cost_estimate=cost,
    )(enc, *extras)


# ----------------------------------------------------------------------------
# Public entry points (forward-pass semantics of the PyTorch module)
# ----------------------------------------------------------------------------
@functools.partial(jax.jit, static_argnames=("s_blk",))
def attention_dot(decoder_hidden, encoder_outputs, s_blk=1024):
    _, S, H = encoder_outputs.shape
    enc = encoder_outputs.reshape(S, H)
    dec = decoder_hidden.reshape(1, H)
    cost = pl.CostEstimate(flops=int(2 * S * H), transcendentals=0,
                           bytes_accessed=int((S * H + H + S) * 4))
    return _run(_dot_kernel, enc, (dec,), S, H, s_blk, cost)


@functools.partial(jax.jit, static_argnames=("s_blk",))
def attention_general(decoder_hidden, encoder_outputs, fc_weight, s_blk=1024):
    _, S, H = encoder_outputs.shape
    enc = encoder_outputs.reshape(S, H)
    # Hoist the tiny (1,H)x(H,H) projection out of the kernel entirely: done
    # once here, so 'general' has the same per-step cost as 'dot' and never
    # DMAs the weight.
    proj = (decoder_hidden.reshape(1, H) @ fc_weight.T).astype(jnp.float32)
    cost = pl.CostEstimate(flops=int(2 * S * H), transcendentals=0,
                           bytes_accessed=int((S * H + H + S) * 4))
    return _run(_dot_kernel, enc, (proj,), S, H, s_blk, cost)


@functools.partial(jax.jit, static_argnames=("s_blk",))
def attention_concat(decoder_hidden, encoder_outputs, fc_weight, v_weight,
                     s_blk=1024):
    _, S, H = encoder_outputs.shape
    enc = encoder_outputs.reshape(S, H)
    dec = decoder_hidden.reshape(1, H)
    wt = fc_weight.T                      # (in, out) layout, transposed once
    v = v_weight.reshape(1, H)
    cost = pl.CostEstimate(flops=int(2 * S * H * H + 2 * S * H),
                           transcendentals=int(S * H),
                           bytes_accessed=int((S * H + H * H + 2 * H + S) * 4))
    return _run(_concat_kernel, enc, (dec, wt, v), S, H, s_blk, cost)


# ----------------------------------------------------------------------------
# Pure-JAX references (mirror the PyTorch forward exactly, batch = 1)
# ----------------------------------------------------------------------------
def ref_dot(dec, enc):
    return jnp.einsum("bsh,h->bs", enc, dec.reshape(-1))


def ref_general(dec, enc, w):
    proj = dec @ w.T  # (1, H)
    return jnp.einsum("bsh,h->bs", enc, proj.reshape(-1))


def ref_concat(dec, enc, w, v):
    out = jnp.tanh((dec[:, None, :] + enc) @ w.T)  # (1, S, H)
    return jnp.einsum("bsh,h->bs", out, v.reshape(-1))


if __name__ == "__main__":
    H = 32   # hidden_size
    key = jax.random.PRNGKey(0)

    def make_inputs(S, k):
        k1, k2, k3, k4 = jax.random.split(k, 4)
        dec = jax.random.normal(k1, (1, H), dtype=jnp.float32)
        enc = jax.random.normal(k2, (1, S, H), dtype=jnp.float32)
        w = jax.random.normal(k3, (H, H), dtype=jnp.float32) * 0.1
        v = jax.random.normal(k4, (1, H), dtype=jnp.float32) * 0.1
        return dec, enc, w, v

    # S=8: the toy size implied by the module (single exact block, no masking).
    # S=1500: exercises the tiled path with a ragged tail block (masked store).
    for S in (8, 1500):
        dec, enc, w, v = make_inputs(S, jax.random.fold_in(key, S))

        out_dot = jax.block_until_ready(attention_dot(dec, enc))          # method='dot'
        out_gen = jax.block_until_ready(attention_general(dec, enc, w))   # method='general'
        out_cat = jax.block_until_ready(attention_concat(dec, enc, w, v)) # method='concat'

        assert out_dot.shape == (1, S)
        assert out_gen.shape == (1, S)
        assert out_cat.shape == (1, S)
        assert jnp.allclose(out_dot, ref_dot(dec, enc), atol=1e-4, rtol=1e-4)
        assert jnp.allclose(out_gen, ref_general(dec, enc, w), atol=1e-4, rtol=1e-4)
        assert jnp.allclose(out_cat, ref_concat(dec, enc, w, v), atol=1e-4, rtol=1e-4)

    print("KERNEL_OK")
</pallas_src>

<mosaic_0001>
module attributes {stable_mosaic.version = 11 : i64} {
  func.func @_dot_kernel(%arg0: i32, %arg1: memref<8x32xf32, #tpu.memory_space<vmem>>, %arg2: memref<1x32xf32, #tpu.memory_space<vmem>>, %arg3: memref<1x8xf32, #tpu.memory_space<vmem>>) attributes {dimension_semantics = [#tpu.dimension_semantics<parallel>], iteration_bounds = array<i64: 1>, scalar_prefetch = 0 : i64, scratch_operands = 0 : i64, tpu.core_type = #tpu.core_type<tc>, window_params = [{transform_indices = @transform_0, window_bounds = array<i64: 8, 32>}, {pipeline_mode = #tpu.pipeline_mode<synchronous>, transform_indices = @transform_1, window_bounds = array<i64: 1, 32>}, {transform_indices = @transform_2, window_bounds = array<i64: 1, 8>}]} {
    %c0 = arith.constant 0 : index
    %c0_0 = arith.constant 0 : index
    %0 = vector.load %arg2[%c0, %c0_0] : memref<1x32xf32, #tpu.memory_space<vmem>>, vector<1x32xf32>
    %c0_1 = arith.constant 0 : index
    %c0_2 = arith.constant 0 : index
    %1 = vector.load %arg1[%c0_1, %c0_2] : memref<8x32xf32, #tpu.memory_space<vmem>>, vector<8x32xf32>
    %cst = arith.constant dense<0.000000e+00> : vector<1x8xf32>
    %2 = tpu.matmul %0, %1, %cst {dimension_numbers = #tpu.dot_dimension_numbers<[1], [1], [0], [0], [0, 0, 1, 0], [], []>} : vector<1x32xf32>, vector<8x32xf32>, vector<1x8xf32> -> vector<1x8xf32>
    %c0_3 = arith.constant 0 : index
    %c0_4 = arith.constant 0 : index
    %3 = vector.load %arg3[%c0_3, %c0_4] : memref<1x8xf32, #tpu.memory_space<vmem>>, vector<1x8xf32>
    tpu.vector_store %arg3[%c0_3, %c0_4], %2 {strides = array<i32>} : memref<1x8xf32, #tpu.memory_space<vmem>>, vector<1x8xf32>,
    return
  }
  func.func @transform_0(%arg0: i32) -> (i32, i32) {
    %c0_i32 = arith.constant 0 : i32
    %c0_i32_0 = arith.constant 0 : i32
    return %arg0, %c0_i32 : i32, i32
  }
  func.func @transform_1(%arg0: i32) -> (i32, i32) {
    %c0_i32 = arith.constant 0 : i32
    %c0_i32_0 = arith.constant 0 : i32
    %c0_i32_1 = arith.constant 0 : i32
    return %c0_i32, %c0_i32_0 : i32, i32
  }
  func.func @transform_2(%arg0: i32) -> (i32, i32) {
    %c0_i32 = arith.constant 0 : i32
    %c0_i32_0 = arith.constant 0 : i32
    return %c0_i32, %arg0 : i32, i32
  }
}

</mosaic_0001>

<bundles_post_ra>
// kernel: attention_dot.1
= control target key start
LH: loop header
LB: loop body
LE: loop exit
PB: predicated region body
PF: predicated region fallthrough
CT: control target
= control target key end

     0   :  { %7 = vsyncpa [#allocation3], 0  ;;  %s205_s0 = inlined_call_operand.hbm [shape: f32[8,32], index: 0, kind: input, shape index: {}]   ;;  %s206_s1 = inlined_call_operand.vmem [shape: f32[1,32], index: 1, kind: input, shape index: {}]   ;;  %s207_s2 = inlined_call_operand.hbm [shape: f32[1,8], index: 2, kind: output, shape index: {}]  }
   0x1   :  { %8 = vsyncpa [#allocation4], 0  ;;  %s177_s9 = smov [#allocation2]  }
   0x2   :  { %s15_s10 = sshll.u32 %s177_s9, 4  ;;  %s16_s10 = int_to_ptr.vmem [resolvable:$true] %s15_s10 }
   0x3   :  { %s141_s11 = scalar_lea.vmem %s16_s10, 128  ;;  %p146_p1 = scmp.lt.s32.totalorder %s16_s10, %s16_s10 }
   0x4   :  { %p142_p0 = scmp.ne.s32.totalorder %s16_s10, %s141_s11  ;;  %p147_p2 = scmp.lt.s32.totalorder %s141_s11, %s141_s11 }
   0x6   :  { %p148_p3 = por %p147_p2, %p146_p1 }
   0x8   :  { %p149_p4 = pnand %p148_p3, %p142_p0 }
   0xa   :  { %152 = shalt.err (!%p149_p4)
}
   0xb   :  { %18 = dma.hbm_to_vmem [thread:$0]  %s205_s0, 128, %s16_s10, [#allocation3]  }
   0xc   :  { %173 = dma.done.wait [#allocation3], 128  }
   0xd   :  { %174 = vsyncadd [#allocation3], 4294967168  ;;  %v178_v0 = vmov 0.0   ;;  %vm179_vm0 = vmmov 0   ;;  %vm26_vm1 = vcmask 261120   ;;  %v25_v1 = vld [vmem:[#allocation2] sm:$0xff] }
   0xe   :  { %124 = vmatprep.subr.mxu0 %v178_v0  ;;  %126 = vmatprep.mubr.msk.f32.mxu0 %vm179_vm0, %v178_v0  ;;  %v24_v2 = vld [vmem:[%s206_s1] sm:$0x1]  ;;  %s180_s16 = smov [#allocation5]   ;;  %vm103_vm2 = vcmask 57344  }
   0xf   :  { %125 = vmatpush3.xpose.msk.msra.mxu0 %vm26_vm1, %v25_v1  ;;  %s111_s17 = sshll.u32 %s180_s16, 4  ;;  %s112_s17 = int_to_ptr.vmem [resolvable:$true] %s111_s17 }
  0x10   :  { %s153_s0 = scalar_lea.vmem %s112_s17, 16  ;;  %s157_s18 = scalar_lea.vmem %s112_s17, 32 }
  0x11   :  { %p154_p5 = scmp.ne.s32.totalorder %s112_s17, %s153_s0  ;;  %p158_p6 = scmp.lt.s32.totalorder %s112_s17, %s112_s17 }
  0x12   :  { %127 = vmatmul.mubr.msk.f32.vlgmr.msra.gmra.mxu0 %vm26_vm1, %v24_v2  ;;  %p159_p7 = scmp.lt.s32.totalorder %s157_s18, %s153_s0 }
  0x14   :  { %p160_p8 = por %p159_p7, %p158_p6 }
  0x16   :  { %p161_p9 = pnand %p160_p8, %p154_p5 }
  0xd2   :  { %v99_v3 = vpop.f32.mrf.mxu0 }
  0xd3   :  { %104 = vst.msk [vmem:[#allocation5] sm:$0x1] %vm103_vm2, %v99_v3 }
  0xd4   :  { %v128_v4 = vpop.f32.mrf.mxu0 }
  0xd5   :  { %164 = shalt.err (!%p161_p9)
}
  0xd6   :  { %114 = dma.vmem_to_hbm [thread:$0]  %s112_s17, 16, %s207_s2, [#allocation4]  }
  0xd7   :  { %175 = dma.done.wait [#allocation4], 16  }
  0xd8   :  { %176 = vsyncadd [#allocation4], 4294967280 }
  0xd9   :  { %118 = vsyncpa [#allocation3], 1 }
  0xda   :  { %119 = vsyncpa [#allocation4], 1 }

</bundles_post_ra>
